<compile_context>
chip_gen: v7x
topology: tpu7x:2x2x1
jax: 0.10.0
libtpu: 0.0.40
codegen_flags: <defaults>
</compile_context>

<pallas_src>
import functools

import jax
import jax.numpy as jnp
from jax.experimental import pallas as pl
from jax.experimental.pallas import tpu as pltpu


_EPS = 1e-5
_VMEM_LIMIT = 32 * 1024 * 1024       # explicit scoped-VMEM request (safe v5e..v7x)
_BLOCK_TARGET = 4 * 1024 * 1024      # ~4 MiB streaming blocks for the tiled path
_FUSED_F32_LIMIT = 4 * 1024 * 1024   # fuse when the f32 copy of x is <= 4 MiB


# -----------------------------------------------------------------------------
# Kernels
# -----------------------------------------------------------------------------

def _bn_fused_kernel(x_ref, g_ref, b_ref, o_ref, *, eps, inv_count):
    """Single-pass BN: whole (N, C, L) array resident in VMEM (read once, write once)."""
    x = x_ref[...].astype(jnp.float32)                          # (N, C, L)
    mean = jnp.sum(x, axis=(0, 2), keepdims=True) * inv_count   # (1, C, 1)
    # Biased variance via E[x^2] - E[x]^2 with f32 accumulators; clamp >= 0 to
    # guard against rounding-induced tiny negatives.
    var = jnp.sum(x * x, axis=(0, 2), keepdims=True) * inv_count - mean * mean
    var = jnp.maximum(var, 0.0)
    scale = g_ref[...][None] * jax.lax.rsqrt(var + eps)         # (1, C, 1)
    shift = b_ref[...][None] - mean * scale
    o_ref[...] = (x * scale + shift).astype(o_ref.dtype)


def _bn_stats_kernel(x_ref, sum_ref, sq_ref, *, true_l, tile_l, need_mask):
    """Accumulate per-channel sum / sum-of-squares over a (TN, C, TL) block.

    Grid = (n_batch_tiles, n_l_tiles); the L axis (last) is the reduction axis,
    so sum_ref / sq_ref (blocks (1, C, 1)) stay resident across it.
    """
    li = pl.program_id(1)

    @pl.when(li == 0)
    def _init():
        sum_ref[...] = jnp.zeros_like(sum_ref)
        sq_ref[...] = jnp.zeros_like(sq_ref)

    x = x_ref[...].astype(jnp.float32)                          # (TN, C, TL)
    if need_mask:
        # The last L tile may run past the array end; zero the padding lanes
        # (their content is undefined) so the reduction stays exact.
        col = li * tile_l + jax.lax.broadcasted_iota(jnp.int32, (1, 1, tile_l), 2)
        x = jnp.where(col < true_l, x, 0.0)

    sum_ref[...] += jnp.sum(x, axis=(0, 2), keepdims=True)      # (1, C, 1)
    sq_ref[...] += jnp.sum(x * x, axis=(0, 2), keepdims=True)   # (1, C, 1)


def _bn_norm_kernel(x_ref, params_ref, o_ref):
    """y = x * scale + shift with per-channel folded affine (one mul + one add).

    Note: on a padded last L tile we compute on undefined lanes; Pallas clips
    out-of-bounds block writes, so that padding never reaches HBM.
    """
    scale = params_ref[:, 0:1][None]                            # (1, C, 1) f32
    shift = params_ref[:, 1:2][None]                            # (1, C, 1) f32
    x = x_ref[...].astype(jnp.float32)                          # (TN, C, TL)
    o_ref[...] = (x * scale + shift).astype(o_ref.dtype)


def _bn_nc_kernel(x_ref, g_ref, b_ref, o_ref, *, eps, inv_count):
    """BatchNorm1d on a (N, C) input: C on lanes, reduce over the batch sublanes."""
    x = x_ref[...].astype(jnp.float32)                          # (N, C)
    mean = jnp.sum(x, axis=0, keepdims=True) * inv_count        # (1, C)
    var = jnp.maximum(
        jnp.sum(x * x, axis=0, keepdims=True) * inv_count - mean * mean, 0.0)
    scale = g_ref[...] * jax.lax.rsqrt(var + eps)               # (1, C)
    shift = b_ref[...] - mean * scale
    o_ref[...] = (x * scale + shift).astype(o_ref.dtype)


# -----------------------------------------------------------------------------
# Tiling
# -----------------------------------------------------------------------------

def _choose_tiles(n, c, l, itemsize, target_bytes=_BLOCK_TARGET):
    """Pick (TN, TL): block ~target_bytes, lane tile full-L or a 128-multiple."""
    if c * l * itemsize <= target_bytes:
        tl = l
    else:
        tl = max(128, (target_bytes // (c * itemsize)) // 128 * 128)
        tl = min(tl, l)
    block_bytes = max(1, c * tl * itemsize)
    max_tn = max(1, target_bytes // block_bytes)
    if n >= 2:
        # Keep >= 2 batch tiles so the "parallel" grid axis has at least two
        # slices (keeps both v7x TensorCores busy in pass 1).
        max_tn = max(1, min(max_tn, n // 2))
    tn = 1
    for cand in range(min(n, max_tn), 0, -1):
        if n % cand == 0:                                        # TN must divide N
            tn = cand
            break
    return tn, tl
    # TODO(synk): for small C (<8 sublanes) or small L (<128 lanes, e.g. 7x7
    # feature maps) a batch-folded / channel-folded lane layout would recover
    # up to ~2x VMEM/vreg density; not implemented (risky in-kernel relayout).


# -----------------------------------------------------------------------------
# Wrappers
# -----------------------------------------------------------------------------

@functools.partial(jax.jit, static_argnames=("eps", "force_tiled"))
def _batchnorm_ncl(x, gamma, beta, eps=_EPS, force_tiled=False):
    """Training-mode BatchNorm on a (N, C, L) array, reducing over N and L."""
    N, C, L = x.shape
    itemsize = jnp.dtype(x.dtype).itemsize
    f32_bytes = N * C * L * 4

    if (not force_tiled) and f32_bytes <= _FUSED_F32_LIMIT:
        # ---- fused single-kernel path: 2 HBM passes (read + write) ----------
        g2 = gamma.astype(jnp.float32).reshape(C, 1)
        b2 = beta.astype(jnp.float32).reshape(C, 1)
        return pl.pallas_call(
            functools.partial(_bn_fused_kernel, eps=eps,
                              inv_count=1.0 / float(N * L)),
            out_shape=jax.ShapeDtypeStruct((N, C, L), x.dtype),
            grid=(1,),
            in_specs=[pl.BlockSpec((N, C, L), lambda i: (0, 0, 0)),
                      pl.BlockSpec((C, 1), lambda i: (0, 0)),
                      pl.BlockSpec((C, 1), lambda i: (0, 0))],
            out_specs=pl.BlockSpec((N, C, L), lambda i: (0, 0, 0)),
            compiler_params=pltpu.CompilerParams(
                dimension_semantics=("arbitrary",),
                vmem_limit_bytes=_VMEM_LIMIT),
        )(x, g2, b2)

    # ---- tiled two-pass path -------------------------------------------------
    TN, TL = _choose_tiles(N, C, L, itemsize)
    n_btiles = N // TN
    n_ltiles = pl.cdiv(L, TL)
    need_mask = (L % TL) != 0

    # pass 1: per-channel sum / sum-of-squares (f32 accumulators).
    s_part, q_part = pl.pallas_call(
        functools.partial(_bn_stats_kernel, true_l=L, tile_l=TL,
                          need_mask=need_mask),
        out_shape=(jax.ShapeDtypeStruct((n_btiles, C, 1), jnp.float32),
                   jax.ShapeDtypeStruct((n_btiles, C, 1), jnp.float32)),
        grid=(n_btiles, n_ltiles),
        in_specs=[pl.BlockSpec((TN, C, TL), lambda n, l: (n, 0, l))],
        out_specs=(pl.BlockSpec((1, C, 1), lambda n, l: (n, 0, 0)),
                   pl.BlockSpec((1, C, 1), lambda n, l: (n, 0, 0))),
        compiler_params=pltpu.CompilerParams(
            dimension_semantics=("parallel", "arbitrary"),
            vmem_limit_bytes=_VMEM_LIMIT),
    )(x)

    # tiny combine on (C,) vectors (plain XLA; negligible vs streaming time
    # since the tiled path only triggers for large activations).
    count = jnp.float32(N * L)
    mean = jnp.sum(s_part[:, :, 0], axis=0) / count
    var = jnp.maximum(jnp.sum(q_part[:, :, 0], axis=0) / count - mean * mean, 0.0)
    scale = gamma.astype(jnp.float32) * jax.lax.rsqrt(var + eps)
    shift = beta.astype(jnp.float32) - mean * scale
    params = jnp.stack([scale, shift], axis=1)                   # (C, 2)

    # pass 2: y = x * scale + shift.
    return pl.pallas_call(
        _bn_norm_kernel,
        out_shape=jax.ShapeDtypeStruct((N, C, L), x.dtype),
        grid=(n_btiles, n_ltiles),
        in_specs=[pl.BlockSpec((TN, C, TL), lambda n, l: (n, 0, l)),
                  pl.BlockSpec((C, 2), lambda n, l: (0, 0))],
        out_specs=pl.BlockSpec((TN, C, TL), lambda n, l: (n, 0, l)),
        compiler_params=pltpu.CompilerParams(
            dimension_semantics=("parallel", "parallel"),
            vmem_limit_bytes=_VMEM_LIMIT),
    )(x, params)


@functools.partial(jax.jit, static_argnames=("eps",))
def _batchnorm_nc(x, gamma, beta, eps=_EPS):
    """Training-mode BatchNorm1d on a (N, C) array, reducing over N only."""
    N, C = x.shape
    if N * C * 4 <= _FUSED_F32_LIMIT:
        g2 = gamma.astype(jnp.float32).reshape(1, C)
        b2 = beta.astype(jnp.float32).reshape(1, C)
        return pl.pallas_call(
            functools.partial(_bn_nc_kernel, eps=eps, inv_count=1.0 / float(N)),
            out_shape=jax.ShapeDtypeStruct((N, C), x.dtype),
            grid=(1,),
            in_specs=[pl.BlockSpec((N, C), lambda i: (0, 0)),
                      pl.BlockSpec((1, C), lambda i: (0, 0)),
                      pl.BlockSpec((1, C), lambda i: (0, 0))],
            out_specs=pl.BlockSpec((N, C), lambda i: (0, 0)),
            compiler_params=pltpu.CompilerParams(
                dimension_semantics=("arbitrary",),
                vmem_limit_bytes=_VMEM_LIMIT),
        )(x, g2, b2)
    # TODO(synk): tiled (N, C) path without materialized transposes for very
    # large batch*feature products; fall back to the generic NCL kernels.
    y = _batchnorm_ncl(x.T[None], gamma, beta, eps=eps)
    return y[0].T


# -----------------------------------------------------------------------------
# DSBN module analogue
# -----------------------------------------------------------------------------

class DSBN:
    """JAX/Pallas analogue of _DSBN (training-mode forward).

    Per-domain parameters: gamma (num_features,), beta (num_features,).
    # TODO(synk): eval-mode forward (running_mean/running_var buffers and their
    # momentum update) not implemented; training-mode statistics only.
    """

    def __init__(self, num_features: int, n_domain: int, bn_type: str, key):
        if bn_type not in ("1d", "2d"):
            raise ValueError(bn_type)
        self.bn_type = bn_type
        self.num_features = num_features
        self.n_domain = n_domain
        self.valid_domain_idxs = list(range(n_domain))
        self.domain_idx = 0
        kg, kb = jax.random.split(key)
        # PyTorch default is gamma=1, beta=0; perturb so the affine path is
        # actually exercised.
        self.gamma = 1.0 + 0.1 * jax.random.normal(
            kg, (n_domain, num_features), dtype=jnp.float32)
        self.beta = 0.1 * jax.random.normal(
            kb, (n_domain, num_features), dtype=jnp.float32)
        self.eps = _EPS

    def select_bn(self, domain_idx: int = 0):
        assert domain_idx in self.valid_domain_idxs
        self.domain_idx = domain_idx

    def __call__(self, x: jax.Array) -> jax.Array:
        g = self.gamma[self.domain_idx]
        b = self.beta[self.domain_idx]
        if self.bn_type == "2d":
            N, C, H, W = x.shape                      # PyTorch NCHW
            assert C == self.num_features
            y = _batchnorm_ncl(x.reshape(N, C, H * W), g, b, eps=self.eps)
            return y.reshape(N, C, H, W)
        # '1d': x is (N, C, L) or (N, C)
        if x.ndim == 3:
            assert x.shape[1] == self.num_features
            return _batchnorm_ncl(x, g, b, eps=self.eps)
        assert x.shape[1] == self.num_features
        return _batchnorm_nc(x, g, b, eps=self.eps)


# -----------------------------------------------------------------------------
# References & demo
# -----------------------------------------------------------------------------

def _reference_bn2d(x, gamma, beta, eps=_EPS):
    """Pure-JAX reference (PyTorch BatchNorm2d, training mode)."""
    mean = jnp.mean(x, axis=(0, 2, 3), keepdims=True)
    var = jnp.mean((x - mean) ** 2, axis=(0, 2, 3), keepdims=True)
    g = gamma.reshape(1, -1, 1, 1)
    b = beta.reshape(1, -1, 1, 1)
    return (x - mean) * jax.lax.rsqrt(var + eps) * g + b


if __name__ == "__main__":
    key = jax.random.PRNGKey(0)
    k_x, k_p, k_x1, k_x2 = jax.random.split(key, 4)

    # --- BatchNorm2d (NCHW), exercises the fused single-kernel path ----------
    N, C, H, W = 2, 4, 16, 16
    x = jax.random.normal(k_x, (N, C, H, W), dtype=jnp.float32)
    dsbn = DSBN(num_features=C, n_domain=3, bn_type="2d", key=k_p)
    dsbn.select_bn(1)  # pick domain 1
    y = jax.block_until_ready(dsbn(x))
    y_ref = _reference_bn2d(x, dsbn.gamma[1], dsbn.beta[1])
    assert y.shape == x.shape and y.dtype == x.dtype
    err = float(jnp.max(jnp.abs(y - y_ref)))
    assert jnp.allclose(y, y_ref, atol=2e-4, rtol=2e-4), err

    # --- forced tiled two-pass path (small shape, checks the streaming path) -
    x3 = jax.random.normal(k_x1, (4, C, 256), dtype=jnp.float32)
    y3 = jax.block_until_ready(
        _batchnorm_ncl(x3, dsbn.gamma[1], dsbn.beta[1], eps=_EPS, force_tiled=True))
    m3 = jnp.mean(x3, axis=(0, 2), keepdims=True)
    v3 = jnp.mean((x3 - m3) ** 2, axis=(0, 2), keepdims=True)
    y3_ref = ((x3 - m3) * jax.lax.rsqrt(v3 + _EPS)
              * dsbn.gamma[1].reshape(1, -1, 1) + dsbn.beta[1].reshape(1, -1, 1))
    err3 = float(jnp.max(jnp.abs(y3 - y3_ref)))
    assert jnp.allclose(y3, y3_ref, atol=2e-4, rtol=2e-4), err3

    # --- BatchNorm1d on a (N, C) input (dedicated kernel, no transposes) -----
    dsbn1d = DSBN(num_features=32, n_domain=2, bn_type="1d", key=k_p)
    dsbn1d.select_bn(0)
    x2 = jax.random.normal(k_x2, (8, 32), dtype=jnp.float32)
    y2 = jax.block_until_ready(dsbn1d(x2))
    m2 = jnp.mean(x2, axis=0, keepdims=True)
    v2 = jnp.mean((x2 - m2) ** 2, axis=0, keepdims=True)
    y2_ref = (x2 - m2) * jax.lax.rsqrt(v2 + _EPS) * dsbn1d.gamma[0] + dsbn1d.beta[0]
    err2 = float(jnp.max(jnp.abs(y2 - y2_ref)))
    assert jnp.allclose(y2, y2_ref, atol=2e-4, rtol=2e-4), err2

    print("KERNEL_OK")
</pallas_src>

<mosaic_0001>
module attributes {stable_mosaic.version = 11 : i64} {
  func.func @_bn_fused_kernel(%arg0: i32, %arg1: memref<2x4x256xf32, #tpu.memory_space<vmem>>, %arg2: memref<4x1xf32, #tpu.memory_space<vmem>>, %arg3: memref<4x1xf32, #tpu.memory_space<vmem>>, %arg4: memref<2x4x256xf32, #tpu.memory_space<vmem>>) attributes {dimension_semantics = [#tpu.dimension_semantics<arbitrary>], iteration_bounds = array<i64: 1>, scalar_prefetch = 0 : i64, scratch_operands = 0 : i64, tpu.core_type = #tpu.core_type<tc>, window_params = [{pipeline_mode = #tpu.pipeline_mode<synchronous>, transform_indices = @transform_0, window_bounds = array<i64: 2, 4, 256>}, {pipeline_mode = #tpu.pipeline_mode<synchronous>, transform_indices = @transform_1, window_bounds = array<i64: 4, 1>}, {pipeline_mode = #tpu.pipeline_mode<synchronous>, transform_indices = @transform_2, window_bounds = array<i64: 4, 1>}, {pipeline_mode = #tpu.pipeline_mode<synchronous>, transform_indices = @transform_3, window_bounds = array<i64: 2, 4, 256>}]} {
    %c0 = arith.constant 0 : index
    %c0_0 = arith.constant 0 : index
    %c0_1 = arith.constant 0 : index
    %0 = vector.load %arg1[%c0, %c0_0, %c0_1] : memref<2x4x256xf32, #tpu.memory_space<vmem>>, vector<2x4x256xf32>
    %cst = arith.constant dense<0.000000e+00> : vector<4xf32>
    %1 = vector.multi_reduction <add>, %0, %cst [0, 2] : vector<2x4x256xf32> to vector<4xf32>
    %2 = vector.shape_cast %1 : vector<4xf32> to vector<1x4x1xf32>
    %cst_2 = arith.constant 0.001953125 : f32
    %3 = vector.broadcast %cst_2 : f32 to vector<1x4x1xf32>
    %4 = arith.mulf %2, %3 : vector<1x4x1xf32>
    %5 = arith.mulf %0, %0 : vector<2x4x256xf32>
    %cst_3 = arith.constant dense<0.000000e+00> : vector<4xf32>
    %6 = vector.multi_reduction <add>, %5, %cst_3 [0, 2] : vector<2x4x256xf32> to vector<4xf32>
    %7 = vector.shape_cast %6 : vector<4xf32> to vector<1x4x1xf32>
    %cst_4 = arith.constant 0.001953125 : f32
    %8 = vector.broadcast %cst_4 : f32 to vector<1x4x1xf32>
    %9 = arith.mulf %7, %8 : vector<1x4x1xf32>
    %10 = arith.mulf %4, %4 : vector<1x4x1xf32>
    %11 = arith.subf %9, %10 : vector<1x4x1xf32>
    %cst_5 = arith.constant 0.000000e+00 : f32
    %12 = vector.broadcast %cst_5 : f32 to vector<1x4x1xf32>
    %13 = arith.maximumf %11, %12 : vector<1x4x1xf32>
    %c0_6 = arith.constant 0 : index
    %c0_7 = arith.constant 0 : index
    %14 = vector.load %arg2[%c0_6, %c0_7] : memref<4x1xf32, #tpu.memory_space<vmem>>, vector<4x1xf32>
    %15 = vector.shape_cast %14 : vector<4x1xf32> to vector<1x4x1xf32>
    %cst_8 = arith.constant 9.99999974E-6 : f32
    %16 = vector.broadcast %cst_8 : f32 to vector<1x4x1xf32>
    %17 = arith.addf %13, %16 : vector<1x4x1xf32>
    %18 = math.rsqrt %17 : vector<1x4x1xf32>
    %19 = arith.mulf %15, %18 : vector<1x4x1xf32>
    %c0_9 = arith.constant 0 : index
    %c0_10 = arith.constant 0 : index
    %20 = vector.load %arg3[%c0_9, %c0_10] : memref<4x1xf32, #tpu.memory_space<vmem>>, vector<4x1xf32>
    %21 = vector.shape_cast %20 : vector<4x1xf32> to vector<1x4x1xf32>
    %22 = arith.mulf %4, %19 : vector<1x4x1xf32>
    %23 = arith.subf %21, %22 : vector<1x4x1xf32>
    %24 = vector.broadcast %19 : vector<1x4x1xf32> to vector<2x4x256xf32>
    %25 = arith.mulf %0, %24 : vector<2x4x256xf32>
    %26 = vector.broadcast %23 : vector<1x4x1xf32> to vector<2x4x256xf32>
    %27 = arith.addf %25, %26 : vector<2x4x256xf32>
    %c0_11 = arith.constant 0 : index
    %c0_12 = arith.constant 0 : index
    %c0_13 = arith.constant 0 : index
    %28 = vector.load %arg4[%c0_11, %c0_12, %c0_13] : memref<2x4x256xf32, #tpu.memory_space<vmem>>, vector<2x4x256xf32>
    tpu.vector_store %arg4[%c0_11, %c0_12, %c0_13], %27 {strides = array<i32>} : memref<2x4x256xf32, #tpu.memory_space<vmem>>, vector<2x4x256xf32>,
    return
  }
  func.func @transform_0(%arg0: i32) -> (i32, i32, i32) {
    %c0_i32 = arith.constant 0 : i32
    %c0_i32_0 = arith.constant 0 : i32
    %c0_i32_1 = arith.constant 0 : i32
    %c0_i32_2 = arith.constant 0 : i32
    return %c0_i32, %c0_i32_0, %c0_i32_1 : i32, i32, i32
  }
  func.func @transform_1(%arg0: i32) -> (i32, i32) {
    %c0_i32 = arith.constant 0 : i32
    %c0_i32_0 = arith.constant 0 : i32
    %c0_i32_1 = arith.constant 0 : i32
    return %c0_i32, %c0_i32_0 : i32, i32
  }
  func.func @transform_2(%arg0: i32) -> (i32, i32) {
    %c0_i32 = arith.constant 0 : i32
    %c0_i32_0 = arith.constant 0 : i32
    %c0_i32_1 = arith.constant 0 : i32
    return %c0_i32, %c0_i32_0 : i32, i32
  }
  func.func @transform_3(%arg0: i32) -> (i32, i32, i32) {
    %c0_i32 = arith.constant 0 : i32
    %c0_i32_0 = arith.constant 0 : i32
    %c0_i32_1 = arith.constant 0 : i32
    %c0_i32_2 = arith.constant 0 : i32
    return %c0_i32, %c0_i32_0, %c0_i32_1 : i32, i32, i32
  }
}

</mosaic_0001>

<bundles_post_ra>
// kernel: _batchnorm_ncl.1
= control target key start
LH: loop header
LB: loop body
LE: loop exit
PB: predicated region body
PF: predicated region fallthrough
CT: control target
= control target key end

     0   :  { %vm23_vm0 = vcmask 1043456   ;;  %s200_s0 = inlined_call_operand.vmem [shape: f32[2,4,256], index: 0, kind: input, shape index: {}]   ;;  %s201_s1 = inlined_call_operand.vmem [shape: f32[4,1], index: 1, kind: input, shape index: {}]   ;;  %s202_s2 = inlined_call_operand.vmem [shape: f32[4,1], index: 2, kind: input, shape index: {}]   ;;  %s203_s3 = inlined_call_operand.hbm [shape: f32[2,4,256], index: 3, kind: output, shape index: {}]  }
   0x1   :  { %v15_v0 = vld [vmem:[%s200_s0] sm:$0xff]  ;;  %v16_v1 = vld [vmem:[%s200_s0 + $0x8] sm:$0xff] }
   0x2   :  { %8 = vsyncpa [#allocation3], 0  ;;  %v19_v2 = vcombine.high %v15_v0, %v15_v0  ;;  %v20_v3 = vcombine.high %v16_v1, %v16_v1  ;;  %v24_v4 = vsel %vm23_vm0, %v15_v0, 0.0  ;;  %v34_v5 = vmul.f32 %v15_v0, %v15_v0  ;;  %v55_v31 = vld [vmem:[%s201_s1] sm:$0xf]  ;;  %s145_s19 = smov [#allocation2]  }
   0x3   :  { %v35_v6 = vmul.f32 %v16_v1, %v16_v1  ;;  %v27_v8 = vsel %vm23_vm0, %v16_v1, 0.0  ;;  %v143_v22 = vmov 0   ;;  %v59_v34 = vld [vmem:[%s202_s2] sm:$0xf]  ;;  %v144_v37 = vmov 839922192  }
   0x4   :  { %v25_v7 = vsel %vm23_vm0, %v19_v2, 0.0  ;;  %v38_v10 = vcombine.high %v34_v5, %v34_v5  ;;  %v42_v12 = vsel %vm23_vm0, %v34_v5, 0.0  ;;  %v29_v13 = vsel %vm23_vm0, %v20_v3, 0.0  ;;  %113 = vset.pattern.permute.xlu1 %v143_v22  ;;  %114 = vset.pattern.permute.xlu0 %v143_v22  ;;  %s97_s1 = sshll.u32 %s145_s19, 4  ;;  %s98_s1 = int_to_ptr.vmem [resolvable:$true] %s97_s1 }
   0x5   :  { %v26_v9 = vadd.f32 %v25_v7, %v24_v4  ;;  %v39_v11 = vcombine.high %v35_v6, %v35_v6  ;;  %v45_v16 = vsel %vm23_vm0, %v35_v6, 0.0  ;;  %v67_v38 = vunpack.c.l.s4 %v144_v37  ;;  %s119_s2 = scalar_lea.vmem %s98_s1, 256  ;;  %p124_p1 = scmp.lt.s32.totalorder %s98_s1, %s98_s1 }
   0x6   :  { %v43_v15 = vsel %vm23_vm0, %v38_v10, 0.0  ;;  %v69_v39 = vlaneseq  ;;  %p120_p0 = scmp.ne.s32.totalorder %s98_s1, %s119_s2  ;;  %p125_p2 = scmp.lt.s32.totalorder %s119_s2, %s119_s2 }
   0x7   :  { %v28_v14 = vadd.f32 %v27_v8, %v26_v9  ;;  %v44_v17 = vadd.f32 %v43_v15, %v42_v12  ;;  %v47_v19 = vsel %vm23_vm0, %v39_v11, 0.0  ;;  %v68_v40 = vunpack.c.0.s8 %v67_v38 }
   0x8   :  { %v70_v41 = vshrl.u32 %v69_v39, 7  ;;  %p126_p3 = por %p125_p2, %p124_p1 }
   0x9   :  { %v30_v18 = vadd.f32 %v29_v13, %v28_v14  ;;  %v46_v20 = vadd.f32 %v45_v16, %v44_v17 }
   0xa   :  { %v71_v42 = vsub.s32 %v68_v40, %v70_v41  ;;  %p127_p4 = pnand %p126_p3, %p120_p0 }
   0xb   :  { %31 = vadd.xlane.f32.xlu0 %v30_v18  ;;  %v48_v21 = vadd.f32 %v47_v19, %v46_v20 }
   0xf   :  { %49 = vadd.xlane.f32.xlu0 %v48_v21 }
  0x98   :  { %v32_v23 = vpop.xlane.xlu0 %31 }
  0x99   :  { %v33_v24 = vmul.f32 0.001953125, %v32_v23 }
  0x9b   :  { %v52_v26 = vmul.f32 %v33_v24, %v33_v24 }
  0x9c   :  { %v50_v25 = vpop.xlane.xlu0 %49 }
  0x9d   :  { %v51_v27 = vmul.f32 0.001953125, %v50_v25 }
  0x9f   :  { %v53_v28 = vsub.f32 %v51_v27, %v52_v26 }
  0xa1   :  { %v54_v29 = vmax.f32 %v53_v28, 0.0 }
  0xa3   :  { %v56_v30 = vadd.f32 1e-05, %v54_v29 }
  0xa5   :  { %117 = vrsqrt.f32 %v56_v30 }
  0xaf   :  { %v118_v32 = vpop.eup %117 }
  0xb0   :  { %v58_v33 = vmul.f32 %v118_v32, %v55_v31 }
  0xb2   :  { %64 = vperm.xlu1 %113, %v58_v33   ;;  %v60_v35 = vmul.f32 %v58_v33, %v33_v24 }
  0xb4   :  { %v61_v36 = vsub.f32 %v59_v34, %v60_v35 }
  0xb6   :  { %78 = vperm.xlu1 %113, %v61_v36  }
 0x131   :  { %v65_v43 = vpop.permute.xlu1 %64 }
 0x132   :  { %v72_v44 = vrot.slane %v65_v43, %v71_v42 }
 0x134   :  { %v74_v46 = vmul.f32 %v72_v44, %v15_v0  ;;  %v75_v47 = vmul.f32 %v72_v44, %v16_v1 }
 0x135   :  { %v79_v45 = vpop.permute.xlu1 %78 }
 0x136   :  { %v86_v48 = vrot.slane %v79_v45, %v71_v42 }
 0x138   :  { %v88_v49 = vadd.f32 %v86_v48, %v74_v46  ;;  %v89_v50 = vadd.f32 %v86_v48, %v75_v47 }
 0x13a   :  { %90 = vst [vmem:[#allocation2] sm:$0xff] %v88_v49  ;;  %91 = vst [vmem:[#allocation2 + $0x8] sm:$0xff] %v89_v50 }
 0x13b   :  { %130 = shalt.err (!%p127_p4)
}
 0x13c   :  { %s131_s22 = scalar_lea.hbm %s203_s3, 256 }
 0x13d   :  { %p132_p5 = scmp.ne.s32.totalorder %s203_s3, %s131_s22  ;;  %p135_p6 = scmp.lt.u32.totalorder %s131_s22, %s203_s3 }
 0x13f   :  { %p137_p7 = pnand %p135_p6, %p132_p5 }
 0x141   :  { %140 = shalt.err (!%p137_p7)
}
 0x142   :  { %s146_s27 = smov 128   ;;  %s147_s28 = smov 8  }
 0x143   :  { %103 = dma.vmem_to_hbm [thread:$0]  %s98_s1, 256, %s203_s3, [#allocation3], %s146_s27, %s146_s27, %s147_s28  }
 0x144   :  { %141 = dma.done.wait [#allocation3], 256  }
 0x145   :  { %142 = vsyncadd [#allocation3], 4294967040 }
 0x146   :  { %107 = vsyncpa [#allocation3], 1 }

</bundles_post_ra>
